<compile_context>
chip_gen: v7x
topology: tpu7x:2x2x1
jax: 0.10.0
libtpu: 0.0.40
codegen_flags: <defaults>
</compile_context>

<pallas_src>
import jax
import jax.numpy as jnp
from jax.experimental import pallas as pl
from jax.experimental.pallas import tpu as pltpu


def dnn_kernel(x_ref,
               w1_ref, b1_ref,
               w2_ref, b2_ref,
               w3_ref, b3_ref,
               w4_ref, b4_ref,
               o_ref):
    x = x_ref[...].astype(jnp.float32)

    # linear1 -> (dropout: identity at inference) -> relu
    h = jnp.dot(x, w1_ref[...], preferred_element_type=jnp.float32) + b1_ref[...]
    h = jnp.maximum(h, 0.0)

    # linear2 -> relu
    h = jnp.dot(h, w2_ref[...], preferred_element_type=jnp.float32) + b2_ref[...]
    h = jnp.maximum(h, 0.0)

    # linear3 -> relu
    h = jnp.dot(h, w3_ref[...], preferred_element_type=jnp.float32) + b3_ref[...]
    h = jnp.maximum(h, 0.0)

    # linear4 -> softmax over dim=1 (features)
    logits = jnp.dot(h, w4_ref[...], preferred_element_type=jnp.float32) + b4_ref[...]
    m = jnp.max(logits, axis=-1, keepdims=True)
    e = jnp.exp(logits - m)
    denom = jnp.sum(e, axis=-1, keepdims=True)
    # approx=True -> EUP reciprocal slot (otherwise idle here); accuracy loss
    # is negligible for a 2-class softmax.
    o_ref[...] = (e * pl.reciprocal(denom, approx=True)).astype(o_ref.dtype)


def _round_up(n, m):
    return ((n + m - 1) // m) * m


def dnn_forward(x, params, *, tile_b=512):
    """x: [B, input_size] float32; params: flat list of (w, b) with w in [in, out] layout."""
    B, input_size = x.shape
    output_size = params[-1][0].shape[1]

    # Generation-appropriate tile: >=256 fills the v6e/v7x MXU; 128+ is enough
    # on v5e.  Clamp down for tiny batches (keep it a multiple of 8 for the
    # f32 sublane constraint).  At tile_b=512: x tile = 512*input_size*4 B and
    # the fattest activation tile = 512*128*4 B = 256 KiB, far under the v7x
    # 32 MiB default scoped VMEM limit even with double-buffering.
    tile_b = max(8, min(tile_b, _round_up(B, 8)))

    # Pad ragged batches up to a multiple of tile_b so the tail tile never
    # reads/writes out-of-bounds rows; padding is sliced back off below.
    B_pad = _round_up(B, tile_b)
    if B_pad != B:
        x = jnp.pad(x, ((0, B_pad - B), (0, 0)))

    flat_args = [x]
    in_specs = [pl.BlockSpec((tile_b, input_size), lambda i: (i, 0))]
    for w, b in params:
        flat_args.append(w)
        in_specs.append(pl.BlockSpec(w.shape, lambda i: (0, 0)))          # VMEM-resident
        flat_args.append(b.reshape(1, -1))                                # 2-D bias for clean broadcast
        in_specs.append(pl.BlockSpec((1, b.shape[0]), lambda i: (0, 0)))  # VMEM-resident

    # Advisory cost estimate for the XLA scheduler.
    sizes = [input_size] + [w.shape[1] for w, _ in params]
    flops = 2 * B_pad * sum(sizes[i] * sizes[i + 1] for i in range(len(sizes) - 1))
    bytes_accessed = (B_pad * input_size * 4 + B_pad * output_size * 4
                      + sum(w.size * 4 + b.size * 4 for w, b in params))
    cost = pl.CostEstimate(flops=flops,
                           transcendentals=B_pad * output_size,
                           bytes_accessed=bytes_accessed)

    out = pl.pallas_call(
        dnn_kernel,
        out_shape=jax.ShapeDtypeStruct((B_pad, output_size), jnp.float32),
        grid=(B_pad // tile_b,),
        in_specs=in_specs,
        out_specs=pl.BlockSpec((tile_b, output_size), lambda i: (i, 0)),
        compiler_params=pltpu.CompilerParams(
            dimension_semantics=("parallel",)),   # megacore sharding on v7x
        cost_estimate=cost,
    )(*flat_args)

    return out[:B]


def init_params(key, input_size, hidden_size=(128, 64, 32), output_size=2):
    """Deterministic init mirroring nn.Linear default (uniform ±1/sqrt(fan_in))."""
    sizes = [input_size, *hidden_size, output_size]
    params = []
    for i in range(len(sizes) - 1):
        fan_in, fan_out = sizes[i], sizes[i + 1]
        key, kw, kb = jax.random.split(key, 3)
        bound = 1.0 / jnp.sqrt(fan_in)
        w = jax.random.uniform(kw, (fan_in, fan_out), jnp.float32, -bound, bound)
        b = jax.random.uniform(kb, (fan_out,), jnp.float32, -bound, bound)
        params.append((w, b))
    return params


def dnn_reference(x, params):
    h = x
    for i, (w, b) in enumerate(params):
        h = h @ w + b
        if i < len(params) - 1:
            h = jnp.maximum(h, 0.0)
    return jax.nn.softmax(h, axis=1)


if __name__ == "__main__":
    key = jax.random.PRNGKey(0)
    k_x, k_p, k_x2 = jax.random.split(key, 3)

    B, INPUT_SIZE = 8, 32
    x = jax.random.normal(k_x, (B, INPUT_SIZE), jnp.float32)
    params = init_params(k_p, INPUT_SIZE)

    # Small-batch path (single grid step).
    out = jax.block_until_ready(dnn_forward(x, params))
    ref = dnn_reference(x, params)
    assert out.shape == (B, 2)
    # approx reciprocal -> slightly looser tolerance than exact f32 divide
    assert jnp.allclose(out, ref, atol=2e-3, rtol=2e-3), "mismatch vs reference (small batch)"
    assert jnp.allclose(jnp.sum(out, axis=1), 1.0, atol=2e-3), "softmax rows must sum to ~1"

    # Multi-tile path with a ragged batch (exercises padding + batch grid).
    B2 = 300
    x2 = jax.random.normal(k_x2, (B2, INPUT_SIZE), jnp.float32)
    out2 = jax.block_until_ready(dnn_forward(x2, params, tile_b=128))
    ref2 = dnn_reference(x2, params)
    assert out2.shape == (B2, 2)
    assert jnp.allclose(out2, ref2, atol=2e-3, rtol=2e-3), "mismatch vs reference (tiled batch)"

    print("KERNEL_OK")
</pallas_src>

<mosaic_0001>
module attributes {stable_mosaic.version = 11 : i64} {
  func.func @dnn_kernel(%arg0: i32, %arg1: memref<8x32xf32, #tpu.memory_space<vmem>>, %arg2: memref<32x128xf32, #tpu.memory_space<vmem>>, %arg3: memref<1x128xf32, #tpu.memory_space<vmem>>, %arg4: memref<128x64xf32, #tpu.memory_space<vmem>>, %arg5: memref<1x64xf32, #tpu.memory_space<vmem>>, %arg6: memref<64x32xf32, #tpu.memory_space<vmem>>, %arg7: memref<1x32xf32, #tpu.memory_space<vmem>>, %arg8: memref<32x2xf32, #tpu.memory_space<vmem>>, %arg9: memref<1x2xf32, #tpu.memory_space<vmem>>, %arg10: memref<8x2xf32, #tpu.memory_space<vmem>>) attributes {dimension_semantics = [#tpu.dimension_semantics<parallel>], iteration_bounds = array<i64: 1>, scalar_prefetch = 0 : i64, scratch_operands = 0 : i64, tpu.core_type = #tpu.core_type<tc>, window_params = [{transform_indices = @transform_0, window_bounds = array<i64: 8, 32>}, {pipeline_mode = #tpu.pipeline_mode<synchronous>, transform_indices = @transform_1, window_bounds = array<i64: 32, 128>}, {pipeline_mode = #tpu.pipeline_mode<synchronous>, transform_indices = @transform_2, window_bounds = array<i64: 1, 128>}, {pipeline_mode = #tpu.pipeline_mode<synchronous>, transform_indices = @transform_3, window_bounds = array<i64: 128, 64>}, {pipeline_mode = #tpu.pipeline_mode<synchronous>, transform_indices = @transform_4, window_bounds = array<i64: 1, 64>}, {pipeline_mode = #tpu.pipeline_mode<synchronous>, transform_indices = @transform_5, window_bounds = array<i64: 64, 32>}, {pipeline_mode = #tpu.pipeline_mode<synchronous>, transform_indices = @transform_6, window_bounds = array<i64: 1, 32>}, {pipeline_mode = #tpu.pipeline_mode<synchronous>, transform_indices = @transform_7, window_bounds = array<i64: 32, 2>}, {pipeline_mode = #tpu.pipeline_mode<synchronous>, transform_indices = @transform_8, window_bounds = array<i64: 1, 2>}, {transform_indices = @transform_9, window_bounds = array<i64: 8, 2>}]} {
    %c0 = arith.constant 0 : index
    %c0_0 = arith.constant 0 : index
    %0 = vector.load %arg1[%c0, %c0_0] : memref<8x32xf32, #tpu.memory_space<vmem>>, vector<8x32xf32>
    %c0_1 = arith.constant 0 : index
    %c0_2 = arith.constant 0 : index
    %1 = vector.load %arg2[%c0_1, %c0_2] : memref<32x128xf32, #tpu.memory_space<vmem>>, vector<32x128xf32>
    %cst = arith.constant dense<0.000000e+00> : vector<8x128xf32>
    %2 = tpu.matmul %0, %1, %cst {dimension_numbers = #tpu.dot_dimension_numbers<[1], [0], [0], [1], [0, 0, 1, 1], [], []>} : vector<8x32xf32>, vector<32x128xf32>, vector<8x128xf32> -> vector<8x128xf32>
    %c0_3 = arith.constant 0 : index
    %c0_4 = arith.constant 0 : index
    %3 = vector.load %arg3[%c0_3, %c0_4] : memref<1x128xf32, #tpu.memory_space<vmem>>, vector<1x128xf32>
    %4 = vector.broadcast %3 : vector<1x128xf32> to vector<8x128xf32>
    %5 = arith.addf %2, %4 : vector<8x128xf32>
    %cst_5 = arith.constant 0.000000e+00 : f32
    %6 = vector.broadcast %cst_5 : f32 to vector<8x128xf32>
    %7 = arith.maximumf %5, %6 : vector<8x128xf32>
    %c0_6 = arith.constant 0 : index
    %c0_7 = arith.constant 0 : index
    %8 = vector.load %arg4[%c0_6, %c0_7] : memref<128x64xf32, #tpu.memory_space<vmem>>, vector<128x64xf32>
    %cst_8 = arith.constant dense<0.000000e+00> : vector<8x64xf32>
    %9 = tpu.matmul %7, %8, %cst_8 {dimension_numbers = #tpu.dot_dimension_numbers<[1], [0], [0], [1], [0, 0, 1, 1], [], []>} : vector<8x128xf32>, vector<128x64xf32>, vector<8x64xf32> -> vector<8x64xf32>
    %c0_9 = arith.constant 0 : index
    %c0_10 = arith.constant 0 : index
    %10 = vector.load %arg5[%c0_9, %c0_10] : memref<1x64xf32, #tpu.memory_space<vmem>>, vector<1x64xf32>
    %11 = vector.broadcast %10 : vector<1x64xf32> to vector<8x64xf32>
    %12 = arith.addf %9, %11 : vector<8x64xf32>
    %cst_11 = arith.constant 0.000000e+00 : f32
    %13 = vector.broadcast %cst_11 : f32 to vector<8x64xf32>
    %14 = arith.maximumf %12, %13 : vector<8x64xf32>
    %c0_12 = arith.constant 0 : index
    %c0_13 = arith.constant 0 : index
    %15 = vector.load %arg6[%c0_12, %c0_13] : memref<64x32xf32, #tpu.memory_space<vmem>>, vector<64x32xf32>
    %cst_14 = arith.constant dense<0.000000e+00> : vector<8x32xf32>
    %16 = tpu.matmul %14, %15, %cst_14 {dimension_numbers = #tpu.dot_dimension_numbers<[1], [0], [0], [1], [0, 0, 1, 1], [], []>} : vector<8x64xf32>, vector<64x32xf32>, vector<8x32xf32> -> vector<8x32xf32>
    %c0_15 = arith.constant 0 : index
    %c0_16 = arith.constant 0 : index
    %17 = vector.load %arg7[%c0_15, %c0_16] : memref<1x32xf32, #tpu.memory_space<vmem>>, vector<1x32xf32>
    %18 = vector.broadcast %17 : vector<1x32xf32> to vector<8x32xf32>
    %19 = arith.addf %16, %18 : vector<8x32xf32>
    %cst_17 = arith.constant 0.000000e+00 : f32
    %20 = vector.broadcast %cst_17 : f32 to vector<8x32xf32>
    %21 = arith.maximumf %19, %20 : vector<8x32xf32>
    %c0_18 = arith.constant 0 : index
    %c0_19 = arith.constant 0 : index
    %22 = vector.load %arg8[%c0_18, %c0_19] : memref<32x2xf32, #tpu.memory_space<vmem>>, vector<32x2xf32>
    %cst_20 = arith.constant dense<0.000000e+00> : vector<8x2xf32>
    %23 = tpu.matmul %21, %22, %cst_20 {dimension_numbers = #tpu.dot_dimension_numbers<[1], [0], [0], [1], [0, 0, 1, 1], [], []>} : vector<8x32xf32>, vector<32x2xf32>, vector<8x2xf32> -> vector<8x2xf32>
    %c0_21 = arith.constant 0 : index
    %c0_22 = arith.constant 0 : index
    %24 = vector.load %arg9[%c0_21, %c0_22] : memref<1x2xf32, #tpu.memory_space<vmem>>, vector<1x2xf32>
    %25 = vector.broadcast %24 : vector<1x2xf32> to vector<8x2xf32>
    %26 = arith.addf %23, %25 : vector<8x2xf32>
    %cst_23 = arith.constant dense<0xFF800000> : vector<8xf32>
    %27 = vector.multi_reduction <maximumf>, %26, %cst_23 [1] : vector<8x2xf32> to vector<8xf32>
    %28 = vector.shape_cast %27 : vector<8xf32> to vector<8x1xf32>
    %29 = vector.broadcast %28 : vector<8x1xf32> to vector<8x2xf32>
    %30 = arith.subf %26, %29 : vector<8x2xf32>
    %31 = math.exp %30 : vector<8x2xf32>
    %cst_24 = arith.constant dense<0.000000e+00> : vector<8xf32>
    %32 = vector.multi_reduction <add>, %31, %cst_24 [1] : vector<8x2xf32> to vector<8xf32>
    %33 = vector.shape_cast %32 : vector<8xf32> to vector<8x1xf32>
    %34 = tpu.reciprocal %33 {approx = true} : vector<8x1xf32> -> vector<8x1xf32>
    %35 = vector.broadcast %34 : vector<8x1xf32> to vector<8x2xf32>
    %36 = arith.mulf %31, %35 : vector<8x2xf32>
    %c0_25 = arith.constant 0 : index
    %c0_26 = arith.constant 0 : index
    %37 = vector.load %arg10[%c0_25, %c0_26] : memref<8x2xf32, #tpu.memory_space<vmem>>, vector<8x2xf32>
    tpu.vector_store %arg10[%c0_25, %c0_26], %36 {strides = array<i32>} : memref<8x2xf32, #tpu.memory_space<vmem>>, vector<8x2xf32>,
    return
  }
  func.func @transform_0(%arg0: i32) -> (i32, i32) {
    %c0_i32 = arith.constant 0 : i32
    %c0_i32_0 = arith.constant 0 : i32
    return %arg0, %c0_i32 : i32, i32
  }
  func.func @transform_1(%arg0: i32) -> (i32, i32) {
    %c0_i32 = arith.constant 0 : i32
    %c0_i32_0 = arith.constant 0 : i32
    %c0_i32_1 = arith.constant 0 : i32
    return %c0_i32, %c0_i32_0 : i32, i32
  }
  func.func @transform_2(%arg0: i32) -> (i32, i32) {
    %c0_i32 = arith.constant 0 : i32
    %c0_i32_0 = arith.constant 0 : i32
    %c0_i32_1 = arith.constant 0 : i32
    return %c0_i32, %c0_i32_0 : i32, i32
  }
  func.func @transform_3(%arg0: i32) -> (i32, i32) {
    %c0_i32 = arith.constant 0 : i32
    %c0_i32_0 = arith.constant 0 : i32
    %c0_i32_1 = arith.constant 0 : i32
    return %c0_i32, %c0_i32_0 : i32, i32
  }
  func.func @transform_4(%arg0: i32) -> (i32, i32) {
    %c0_i32 = arith.constant 0 : i32
    %c0_i32_0 = arith.constant 0 : i32
    %c0_i32_1 = arith.constant 0 : i32
    return %c0_i32, %c0_i32_0 : i32, i32
  }
  func.func @transform_5(%arg0: i32) -> (i32, i32) {
    %c0_i32 = arith.constant 0 : i32
    %c0_i32_0 = arith.constant 0 : i32
    %c0_i32_1 = arith.constant 0 : i32
    return %c0_i32, %c0_i32_0 : i32, i32
  }
  func.func @transform_6(%arg0: i32) -> (i32, i32) {
    %c0_i32 = arith.constant 0 : i32
    %c0_i32_0 = arith.constant 0 : i32
    %c0_i32_1 = arith.constant 0 : i32
    return %c0_i32, %c0_i32_0 : i32, i32
  }
  func.func @transform_7(%arg0: i32) -> (i32, i32) {
    %c0_i32 = arith.constant 0 : i32
    %c0_i32_0 = arith.constant 0 : i32
    %c0_i32_1 = arith.constant 0 : i32
    return %c0_i32, %c0_i32_0 : i32, i32
  }
  func.func @transform_8(%arg0: i32) -> (i32, i32) {
    %c0_i32 = arith.constant 0 : i32
    %c0_i32_0 = arith.constant 0 : i32
    %c0_i32_1 = arith.constant 0 : i32
    return %c0_i32, %c0_i32_0 : i32, i32
  }
  func.func @transform_9(%arg0: i32) -> (i32, i32) {
    %c0_i32 = arith.constant 0 : i32
    %c0_i32_0 = arith.constant 0 : i32
    return %arg0, %c0_i32 : i32, i32
  }
}

</mosaic_0001>

<bundles_post_ra>
// kernel: tpu_custom_call.1
= control target key start
LH: loop header
LB: loop body
LE: loop exit
PB: predicated region body
PF: predicated region fallthrough
CT: control target
= control target key end

     0   :  { %v578_v0 = vmov 0.0|0.0   ;;  %vm579_vm0 = vmmov 0   ;;  %v580_v4 = vmov 0.0   ;;  %vm44_vm1 = vcmask 261120   ;;  %s774_s1 = inlined_call_operand.vmem [shape: f32[32,128], index: 1, kind: input, shape index: {}]   ;;  %s775_s3 = inlined_call_operand.vmem [shape: f32[128,64], index: 3, kind: input, shape index: {}]   ;;  %s776_s0 = inlined_call_operand.vmem [shape: f32[8,32], index: 0, kind: input, shape index: {}]   ;;  %s777_s5 = inlined_call_operand.vmem [shape: f32[64,32], index: 5, kind: input, shape index: {}]   ;;  %s778_s2 = inlined_call_operand.vmem [shape: f32[1,128], index: 2, kind: input, shape index: {}]   ;;  %s779_s4 = inlined_call_operand.vmem [shape: f32[1,64], index: 4, kind: input, shape index: {}]   ;;  %s780_s7 = inlined_call_operand.vmem [shape: f32[32,2], index: 7, kind: input, shape index: {}]   ;;  %s781_s6 = inlined_call_operand.vmem [shape: f32[1,32], index: 6, kind: input, shape index: {}]   ;;  %s782_s8 = inlined_call_operand.vmem [shape: f32[1,2], index: 8, kind: input, shape index: {}]   ;;  %s783_s9 = inlined_call_operand.vmem [shape: f32[8,2], index: 9, kind: output, shape index: {}]  }
   0x1   :  { %523 = vmatprep.subr.bf16.mxu0 %v578_v0  ;;  %v33_v1 = vld [vmem:[%s774_s1] sm:$0xff]  ;;  %v34_v2 = vld [vmem:[%s774_s1 + $0x8] sm:$0xff]  ;;  %v35_v3 = vld [vmem:[%s774_s1 + $0x10] sm:$0xff]  ;;  %455 = vmatprep.mubr.msk.f32.mxu0 %vm579_vm0, %v580_v4  ;;  %vm228_vm2 = vcmask 523264   ;;  %vm387_vm3 = vcmask 15360  }
   0x2   :  { %v524_v5 = vpack.c.bf16 %v34_v2, %v33_v1  ;;  %v36_v6 = vld [vmem:[%s774_s1 + $0x18] sm:$0xff]  ;;  %529 = vmatprep.subr.bf16.mxu1 %v578_v0  ;;  %v119_v7 = vld [vmem:[%s775_s3] sm:$0xff]  ;;  %490 = vmatprep.mubr.msk.f32.mxu1 %vm579_vm0, %v580_v4  ;;  %v120_v8 = vld [vmem:[%s775_s3 + $0x8] sm:$0xff] }
   0x3   :  { %v121_v9 = vld [vmem:[%s775_s3 + $0x10] sm:$0xff]  ;;  %v122_v10 = vld [vmem:[%s775_s3 + $0x18] sm:$0xff]  ;;  %v527_v11 = vpack.c.bf16 %v36_v6, %v35_v3  ;;  %v530_v12 = vpack.c.bf16 %v120_v8, %v119_v7  ;;  %v123_v14 = vld [vmem:[%s775_s3 + $0x20] sm:$0xff] }
   0x4   :  { %525 = vmatpush3.bf16.msra.mxu0 %v524_v5  ;;  %v533_v13 = vpack.c.bf16 %v122_v10, %v121_v9  ;;  %v124_v15 = vld [vmem:[%s775_s3 + $0x28] sm:$0xff]  ;;  %v32_v16 = vld [vmem:[%s776_s0] sm:$0xff]  ;;  %v125_v18 = vld [vmem:[%s775_s3 + $0x30] sm:$0xff] }
   0x5   :  { %526 = vmatprep.subr.bf16.mxu0 %v578_v0  ;;  %531 = vmatpush3.bf16.msra.mxu1 %v530_v12  ;;  %v536_v17 = vpack.c.bf16 %v124_v15, %v123_v14  ;;  %v126_v19 = vld [vmem:[%s775_s3 + $0x38] sm:$0xff]  ;;  %v127_v21 = vld [vmem:[%s775_s3 + $0x40] sm:$0xff]  ;;  %v128_v22 = vld [vmem:[%s775_s3 + $0x48] sm:$0xff] }
   0x6   :  { %532 = vmatprep.subr.bf16.mxu1 %v578_v0  ;;  %v539_v20 = vpack.c.bf16 %v126_v19, %v125_v18  ;;  %v542_v23 = vpack.c.bf16 %v128_v22, %v127_v21  ;;  %v129_v24 = vld [vmem:[%s775_s3 + $0x50] sm:$0xff]  ;;  %v130_v25 = vld [vmem:[%s775_s3 + $0x58] sm:$0xff]  ;;  %v131_v27 = vld [vmem:[%s775_s3 + $0x60] sm:$0xff] }
   0x7   :  { %v545_v26 = vpack.c.bf16 %v130_v25, %v129_v24  ;;  %v132_v28 = vld [vmem:[%s775_s3 + $0x68] sm:$0xff]  ;;  %v133_v30 = vld [vmem:[%s775_s3 + $0x70] sm:$0xff]  ;;  %v134_v31 = vld [vmem:[%s775_s3 + $0x78] sm:$0xff] }
   0x8   :  { %528 = vmatpush3.bf16.msra.mxu0 %v527_v11  ;;  %v548_v29 = vpack.c.bf16 %v132_v28, %v131_v27  ;;  %v551_v32 = vpack.c.bf16 %v134_v31, %v133_v30  ;;  %v213_v33 = vld [vmem:[%s777_s5] sm:$0xff]  ;;  %v214_v34 = vld [vmem:[%s777_s5 + $0x8] sm:$0xff]  ;;  %v215_v35 = vld [vmem:[%s777_s5 + $0x10] sm:$0xff] }
   0x9   :  { %553 = vmatprep.subr.bf16.mxu0 %v578_v0  ;;  %534 = vmatpush3.bf16.msra.mxu1 %v533_v13  ;;  %v554_v36 = vpack.c.bf16 %v214_v34, %v213_v33  ;;  %v216_v37 = vld [vmem:[%s777_s5 + $0x18] sm:$0xff]  ;;  %v217_v39 = vld [vmem:[%s777_s5 + $0x20] sm:$0xff]  ;;  %v218_v40 = vld [vmem:[%s777_s5 + $0x28] sm:$0xff] }
   0xa   :  { %535 = vmatprep.subr.bf16.mxu1 %v578_v0  ;;  %v557_v38 = vpack.c.bf16 %v216_v37, %v215_v35  ;;  %v560_v41 = vpack.c.bf16 %v218_v40, %v217_v39  ;;  %v404_v42 = vld [vmem:[%s778_s2] ss:$0 sm:$0xff]  ;;  %v219_v47 = vld [vmem:[%s777_s5 + $0x30] sm:$0xff]  ;;  %v220_v48 = vld [vmem:[%s777_s5 + $0x38] sm:$0xff] }
   0xb   :  { %456 = vmatmul.mubr.msk.f32.vlgmr.msra.gmra.mrb[0].mxu0 %vm44_vm1, %v32_v16  ;;  %v563_v49 = vpack.c.bf16 %v220_v48, %v219_v47  ;;  %v406_v50 = vld [vmem:[%s779_s4] ss:$0 sm:$0xff]  ;;  %v304_v52 = vld [vmem:[%s780_s7 + $0x8] sm:$0xff]  ;;  %v305_v58 = vld [vmem:[%s780_s7 + $0x10] sm:$0xff] }
   0xc   :  { %509 = vmatprep.mubr.msk.f32.mxu0 %vm579_vm0, %v580_v4  ;;  %555 = vmatpush3.bf16.msra.mxu0 %v554_v36  ;;  %v303_v51 = vld [vmem:[%s780_s7] sm:$0xff]  ;;  %v306_v59 = vld [vmem:[%s780_s7 + $0x18] sm:$0xff] }
   0xd   :  { %537 = vmatpush3.bf16.msra.mxu1 %v536_v17  ;;  %556 = vmatprep.subr.bf16.mxu0 %v578_v0  ;;  %v566_v56 = vpack.c.bf16 %v304_v52, %v303_v51  ;;  %v569_v60 = vpack.c.bf16 %v306_v59, %v305_v58  ;;  %v407_v61 = vld [vmem:[%s781_s6] ss:$0 sm:$0xff] }
   0xe   :  { %538 = vmatprep.subr.bf16.mxu1 %v578_v0 }
  0x10   :  { %558 = vmatpush3.bf16.msra.mxu0 %v557_v38 }
  0x11   :  { %540 = vmatpush3.bf16.msra.mxu1 %v539_v20  ;;  %559 = vmatprep.subr.bf16.mxu0 %v578_v0 }
  0x12   :  { %541 = vmatprep.subr.bf16.mxu1 %v578_v0 }
  0x14   :  { %561 = vmatpush3.bf16.msra.mxu0 %v560_v41 }
  0x15   :  { %543 = vmatpush3.bf16.msra.mxu1 %v542_v23  ;;  %562 = vmatprep.subr.bf16.mxu0 %v578_v0 }
  0x16   :  { %544 = vmatprep.subr.bf16.mxu1 %v578_v0 }
  0x18   :  { %564 = vmatpush3.bf16.msra.mxu0 %v563_v49 }
  0x19   :  { %546 = vmatpush3.bf16.msra.mxu1 %v545_v26  ;;  %565 = vmatprep.subr.bf16.mxu0 %v578_v0 }
  0x1a   :  { %547 = vmatprep.subr.bf16.mxu1 %v578_v0 }
  0x1d   :  { %549 = vmatpush3.bf16.msra.mxu1 %v548_v29 }
  0x1e   :  { %550 = vmatprep.subr.bf16.mxu1 %v578_v0 }
  0x21   :  { %552 = vmatpush3.bf16.msra.mxu1 %v551_v32 }
  0xde   :  { %v114_v43 = vpop.f32.mrb[0].mxu0 }
  0xdf   :  { %v115_v44 = vadd.f32 %v404_v42, %v114_v43  ;;  %v457_v45 = vpop.f32.mrb[1].mxu0 }
  0xe1   :  { %v118_v46 = vmax.f32 %v115_v44, 0.0 }
  0xe3   :  { %491 = vmatmul.mubr.f32.vlgmr.msra.gmra.mrb[0].mxu1 %v118_v46 }
 0x1b6   :  { %v208_v53 = vpop.f32.mrb[0].mxu1 }
 0x1b7   :  { %v209_v54 = vadd.f32 %v406_v50, %v208_v53  ;;  %v492_v55 = vpop.f32.mrb[1].mxu1 }
 0x1b9   :  { %v212_v57 = vmax.f32 %v209_v54, 0.0 }
 0x1bb   :  { %510 = vmatmul.mubr.msk.f32.vlgmr.msra.gmra.mrb[2].mxu0 %vm228_vm2, %v212_v57 }
 0x1bc   :  { %567 = vmatpush3.bf16.msra.mxu0 %v566_v56  ;;  %520 = vmatprep.mubr.msk.f32.mxu0 %vm579_vm0, %v580_v4 }
 0x1bd   :  { %568 = vmatprep.subr.bf16.mxu0 %v578_v0  ;;  %v409_v0 = vld [vmem:[%s782_s8] ss:$0 sm:$0xff] }
 0x1c0   :  { %570 = vmatpush3.bf16.msra.mxu0 %v569_v60 }
 0x28e   :  { %v298_v62 = vpop.f32.mrb[2].mxu0 }
 0x28f   :  { %v299_v63 = vadd.f32 %v407_v61, %v298_v62  ;;  %v511_v1 = vpop.f32.mrb[3].mxu0 }
 0x291   :  { %v302_v2 = vmax.f32 %v299_v63, 0.0 }
 0x293   :  { %521 = vmatmul.mubr.msk.f32.vlgmr.msra.gmra.mrb[4].mxu0 %vm44_vm1, %v302_v2 }
 0x366   :  { %v383_v3 = vpop.f32.mrb[4].mxu0 }
 0x367   :  { %v384_v4 = vadd.f32 %v409_v0, %v383_v3  ;;  %v522_v5 = vpop.f32.mrb[5].mxu0 }
 0x369   :  { %v388_v6 = vsel %vm387_vm3, %v384_v4, -inf }
 0x36a   :  { %389 = vmax.xlane.f32.xlu0 %v388_v6 }
 0x3f7   :  { %v390_v7 = vpop.xlane.xlu0 %389 }
 0x3f8   :  { %v391_v8 = vsub.f32 %v384_v4, %v390_v7 }
 0x3fa   :  { %v392_v9 = vmul.f32 1.442695, %v391_v8 }
 0x3fc   :  { %574 = vpow2.f32 %v392_v9 }
 0x406   :  { %v575_v10 = vpop.eup %574 }
 0x407   :  { %v394_v11 = vsel %vm387_vm3, %v575_v10, 0.0 }
 0x408   :  { %395 = vadd.xlane.f32.xlu0 %v394_v11 }
 0x495   :  { %v396_v12 = vpop.xlane.xlu0 %395 }
 0x496   :  { %576 = vrcp.f32 %v396_v12 }
 0x4a0   :  { %v577_v13 = vpop.eup %576 }
 0x4a1   :  { %v398_v14 = vmul.f32 %v577_v13, %v575_v10 }
 0x4a3   :  { %399 = vst.msk [vmem:[%s783_s9] sm:$0xff] %vm387_vm3, %v398_v14 }

</bundles_post_ra>
